<compile_context>
chip_gen: v7x
topology: tpu7x:2x2x1
jax: 0.10.0
libtpu: 0.0.40
codegen_flags: <defaults>
</compile_context>

<pallas_src>
from functools import partial

import numpy as np
import jax
import jax.numpy as jnp
from jax.experimental import pallas as pl
from jax.experimental.pallas import tpu as pltpu


def _round_up(a, b):
    return ((a + b - 1) // b) * b


def _wsconv_matmul_kernel(a_ref, b_ref, bias_ref, o_ref, acc_ref):
    """Tiled matmul with fused bias epilogue: o = a @ b + bias."""
    k = pl.program_id(2)

    @pl.when(k == 0)
    def _():
        acc_ref[...] = jnp.zeros_like(acc_ref)

    acc_ref[...] += jnp.dot(a_ref[...], b_ref[...],
                            preferred_element_type=jnp.float32)

    @pl.when(k == pl.num_programs(2) - 1)
    def _():
        o_ref[...] = (acc_ref[...] + bias_ref[...]).astype(o_ref.dtype)


def _matmul_bias(a, b, bias, *, tm=256, tn=128, tk=256):
    """(M,K) @ (K,N) + bias(N,) via a tiled Pallas MXU kernel."""
    M, K = a.shape
    Kb, N = b.shape
    assert K == Kb
    TM = min(tm, _round_up(M, 8))
    TN = min(tn, _round_up(N, 128))
    TK = min(tk, _round_up(K, 128))
    Mp, Kp, Np = _round_up(M, TM), _round_up(K, TK), _round_up(N, TN)

    a_p = jnp.pad(a, ((0, Mp - M), (0, Kp - K)))
    b_p = jnp.pad(b, ((0, Kp - K), (0, Np - N)))
    bias_p = jnp.pad(bias.reshape(1, N), ((0, 0), (0, Np - N)))

    out = pl.pallas_call(
        _wsconv_matmul_kernel,
        out_shape=jax.ShapeDtypeStruct((Mp, Np), jnp.float32),
        grid_spec=pltpu.PrefetchScalarGridSpec(
            num_scalar_prefetch=0,
            grid=(Mp // TM, Np // TN, Kp // TK),
            in_specs=[
                pl.BlockSpec((TM, TK), lambda i, j, k: (i, k)),
                pl.BlockSpec((TK, TN), lambda i, j, k: (k, j)),
                pl.BlockSpec((1, TN), lambda i, j, k: (0, j)),
            ],
            out_specs=pl.BlockSpec((TM, TN), lambda i, j, k: (i, j)),
            scratch_shapes=[pltpu.VMEM((TM, TN), jnp.float32)],
        ),
        compiler_params=pltpu.CompilerParams(
            dimension_semantics=("parallel", "parallel", "arbitrary")),
    )(a_p, b_p, bias_p)
    return out[:M, :N]


def wsconv2d_forward(x, weight, bias, *, stride=1, padding=0, gain=np.sqrt(2)):
    """WSConv2d forward.  x: (N, Cin, H, W), weight: (Cout, Cin, k, k)."""
    N, Cin, H, W = x.shape
    Cout, Cin_w, kh, kw = weight.shape
    assert Cin == Cin_w and kh == kw, "square kernels, matching channels"
    k = kh

    # WeightScale: scale = gain / sqrt(Cin * k * k)  (tiny -> XLA glue)
    ws_scale = jnp.float32(gain / np.sqrt(Cin * k * k))
    w_scaled = weight * ws_scale

    # --- im2col glue (static slices / transposes, XLA) ---
    x_nhwc = jnp.transpose(x, (0, 2, 3, 1))
    x_pad = jnp.pad(x_nhwc,
                    ((0, 0), (padding, padding), (padding, padding), (0, 0)))
    Hp, Wp = H + 2 * padding, W + 2 * padding
    Ho = (Hp - k) // stride + 1
    Wo = (Wp - k) // stride + 1
    cols = []
    for dh in range(k):
        for dw in range(k):
            cols.append(
                x_pad[:, dh:dh + stride * (Ho - 1) + 1:stride,
                         dw:dw + stride * (Wo - 1) + 1:stride, :])
    patches = jnp.concatenate(cols, axis=-1)          # (N, Ho, Wo, k*k*Cin)
    a = patches.reshape(N * Ho * Wo, k * k * Cin)

    # weight as (k*k*Cin, Cout) matching the (kh, kw, Cin) patch ordering
    w_mat = jnp.transpose(w_scaled, (2, 3, 1, 0)).reshape(k * k * Cin, Cout)

    out2d = _matmul_bias(a, w_mat, bias)              # (N*Ho*Wo, Cout)
    out = out2d.reshape(N, Ho, Wo, Cout)
    return jnp.transpose(out, (0, 3, 1, 2))           # NCHW


def wsconv2d_ref(x, weight, bias, *, stride=1, padding=0, gain=np.sqrt(2)):
    """Pure-JAX reference mirroring the PyTorch forward (F.conv2d)."""
    Cin, k = weight.shape[1], weight.shape[2]
    scale = jnp.float32(gain / np.sqrt(Cin * k * k))
    out = jax.lax.conv_general_dilated(
        x, weight * scale,
        window_strides=(stride, stride),
        padding=((padding, padding), (padding, padding)),
        dimension_numbers=("NCHW", "OIHW", "NCHW"),
        precision=jax.lax.Precision.HIGHEST)
    return out + bias[None, :, None, None]


if __name__ == "__main__":
    # WSConv2d(in_channels=4, out_channels=8, kernel_size=3, stride=1, padding=1)
    N, Cin, H, W = 2, 4, 16, 16
    Cout, K, STRIDE, PAD = 8, 3, 1, 1

    key = jax.random.PRNGKey(0)
    kx, kw, kb = jax.random.split(key, 3)
    x = jax.random.normal(kx, (N, Cin, H, W), dtype=jnp.float32)
    weight = jax.random.normal(kw, (Cout, Cin, K, K), dtype=jnp.float32)
    # Module inits bias to zeros; use small nonzero values to exercise the
    # fused bias path (forward semantics are identical for any bias value).
    bias = 0.1 * jax.random.normal(kb, (Cout,), dtype=jnp.float32)

    fwd = jax.jit(partial(wsconv2d_forward, stride=STRIDE, padding=PAD))
    out = jax.block_until_ready(fwd(x, weight, bias))

    ref = wsconv2d_ref(x, weight, bias, stride=STRIDE, padding=PAD)
    # Loose-ish tolerance: the MXU may round f32 operands through bf16 passes.
    np.testing.assert_allclose(np.asarray(out), np.asarray(ref),
                               atol=2e-2, rtol=2e-2)

    print("KERNEL_OK")
</pallas_src>

<mosaic_0001>
module attributes {stable_mosaic.version = 11 : i64} {
  func.func @_wsconv_matmul_kernel(%arg0: i32, %arg1: i32, %arg2: i32, %arg3: memref<256x128xf32, #tpu.memory_space<vmem>>, %arg4: memref<128x128xf32, #tpu.memory_space<vmem>>, %arg5: memref<1x128xf32, #tpu.memory_space<vmem>>, %arg6: memref<256x128xf32, #tpu.memory_space<vmem>>, %arg7: memref<256x128xf32, #tpu.memory_space<vmem>>) attributes {dimension_semantics = [#tpu.dimension_semantics<parallel>, #tpu.dimension_semantics<parallel>, #tpu.dimension_semantics<arbitrary>], iteration_bounds = array<i64: 2, 1, 1>, scalar_prefetch = 0 : i64, scratch_operands = 1 : i64, tpu.core_type = #tpu.core_type<tc>, window_params = [{transform_indices = @transform_0, window_bounds = array<i64: 256, 128>}, {transform_indices = @transform_1, window_bounds = array<i64: 128, 128>}, {transform_indices = @transform_2, window_bounds = array<i64: 1, 128>}, {transform_indices = @transform_3, window_bounds = array<i64: 256, 128>}]} {
    %c0_i32 = arith.constant 0 : i32
    %0 = arith.cmpi eq, %arg2, %c0_i32 : i32
    %1 = arith.extui %0 : i1 to i32
    %c0_i32_0 = arith.constant 0 : i32
    %2 = arith.cmpi ne, %1, %c0_i32_0 : i32
    scf.if %2 {
      %cst_10 = arith.constant 0.000000e+00 : f32
      %12 = vector.broadcast %cst_10 : f32 to vector<256x128xf32>
      %c0_11 = arith.constant 0 : index
      %c0_12 = arith.constant 0 : index
      %13 = vector.load %arg7[%c0_11, %c0_12] : memref<256x128xf32, #tpu.memory_space<vmem>>, vector<256x128xf32>
      tpu.vector_store %arg7[%c0_11, %c0_12], %12 {strides = array<i32>} : memref<256x128xf32, #tpu.memory_space<vmem>>, vector<256x128xf32>,
    } else {
    }
    %c0 = arith.constant 0 : index
    %c0_1 = arith.constant 0 : index
    %3 = vector.load %arg7[%c0, %c0_1] : memref<256x128xf32, #tpu.memory_space<vmem>>, vector<256x128xf32>
    %c0_2 = arith.constant 0 : index
    %c0_3 = arith.constant 0 : index
    %4 = vector.load %arg3[%c0_2, %c0_3] : memref<256x128xf32, #tpu.memory_space<vmem>>, vector<256x128xf32>
    %c0_4 = arith.constant 0 : index
    %c0_5 = arith.constant 0 : index
    %5 = vector.load %arg4[%c0_4, %c0_5] : memref<128x128xf32, #tpu.memory_space<vmem>>, vector<128x128xf32>
    %cst = arith.constant dense<0.000000e+00> : vector<256x128xf32>
    %6 = tpu.matmul %4, %5, %cst {dimension_numbers = #tpu.dot_dimension_numbers<[1], [0], [0], [1], [0, 0, 1, 1], [], []>} : vector<256x128xf32>, vector<128x128xf32>, vector<256x128xf32> -> vector<256x128xf32>
    %7 = arith.addf %3, %6 : vector<256x128xf32>
    %c0_6 = arith.constant 0 : index
    %c0_7 = arith.constant 0 : index
    %8 = vector.load %arg7[%c0_6, %c0_7] : memref<256x128xf32, #tpu.memory_space<vmem>>, vector<256x128xf32>
    tpu.vector_store %arg7[%c0_6, %c0_7], %7 {strides = array<i32>} : memref<256x128xf32, #tpu.memory_space<vmem>>, vector<256x128xf32>,
    %c0_i32_8 = arith.constant 0 : i32
    %9 = arith.cmpi eq, %arg2, %c0_i32_8 : i32
    %10 = arith.extui %9 : i1 to i32
    %c0_i32_9 = arith.constant 0 : i32
    %11 = arith.cmpi ne, %10, %c0_i32_9 : i32
    scf.if %11 {
      %c0_10 = arith.constant 0 : index
      %c0_11 = arith.constant 0 : index
      %12 = vector.load %arg7[%c0_10, %c0_11] : memref<256x128xf32, #tpu.memory_space<vmem>>, vector<256x128xf32>
      %c0_12 = arith.constant 0 : index
      %c0_13 = arith.constant 0 : index
      %13 = vector.load %arg5[%c0_12, %c0_13] : memref<1x128xf32, #tpu.memory_space<vmem>>, vector<1x128xf32>
      %14 = vector.broadcast %13 : vector<1x128xf32> to vector<256x128xf32>
      %15 = arith.addf %12, %14 : vector<256x128xf32>
      %c0_14 = arith.constant 0 : index
      %c0_15 = arith.constant 0 : index
      %16 = vector.load %arg6[%c0_14, %c0_15] : memref<256x128xf32, #tpu.memory_space<vmem>>, vector<256x128xf32>
      tpu.vector_store %arg6[%c0_14, %c0_15], %15 {strides = array<i32>} : memref<256x128xf32, #tpu.memory_space<vmem>>, vector<256x128xf32>,
    } else {
    }
    return
  }
  func.func @transform_0(%arg0: i32, %arg1: i32, %arg2: i32) -> (i32, i32) {
    %c0_i32 = arith.constant 0 : i32
    return %arg0, %arg2 : i32, i32
  }
  func.func @transform_1(%arg0: i32, %arg1: i32, %arg2: i32) -> (i32, i32) {
    %c0_i32 = arith.constant 0 : i32
    return %arg2, %arg1 : i32, i32
  }
  func.func @transform_2(%arg0: i32, %arg1: i32, %arg2: i32) -> (i32, i32) {
    %c0_i32 = arith.constant 0 : i32
    %c0_i32_0 = arith.constant 0 : i32
    return %c0_i32, %arg1 : i32, i32
  }
  func.func @transform_3(%arg0: i32, %arg1: i32, %arg2: i32) -> (i32, i32) {
    %c0_i32 = arith.constant 0 : i32
    return %arg0, %arg1 : i32, i32
  }
}

</mosaic_0001>

<bundles_post_ra>
// kernel: wsconv2d_forward.1
= control target key start
LH: loop header
LB: loop body
LE: loop exit
PB: predicated region body
PF: predicated region fallthrough
CT: control target
= control target key end

     0   :  { %s1139_s12 = smov 0   ;;  %s1141_s13 = smov 0   ;;  %s1332_s0 = inlined_call_operand.vmem [shape: f32[512,128], index: 0, kind: input, shape index: {}]   ;;  %s1333_s1 = inlined_call_operand.vmem [shape: f32[128,128], index: 1, kind: input, shape index: {}]   ;;  %s1334_s2 = inlined_call_operand.vmem [shape: f32[1,128], index: 2, kind: input, shape index: {}]   ;;  %s1335_s3 = inlined_call_operand.vmem [shape: f32[512,128], index: 3, kind: output, shape index: {}]  }
   0x1   :  { %s1143_s14 = smov 0  }
   0x2 LB: > { %s32_s15 = sadd.s32 1, %s1113_s13  ;;  %p887_p0 = scmp.ge.s32.totalorder %s1117_s14, 1  ;;  %s1117_s14 = sphi %s1143_s14, %s13_s14   ;;  %s1113_s13 = sphi %s1141_s13, %s1337_s13   ;;  %s1109_s12 = sphi %s1139_s12, %s1336_s12  }
   0x3   : > { %p34_p1 = scmp.ge.s32.totalorder %s32_s15, 2  ;;  %p188_p2 = scmp.lt.s32.totalorder %s1117_s14, 3 }
   0x5   : > { %s1339_s15 = smov (%p34_p1, %s32_s15), 0  ;;  %p189_p3 = pnand %p887_p0, %p188_p2 }
   0x6   : > { %v359_v0 = vld [vmem:[%s1333_s1] sm:$0xff] (!%p189_p3)  ;;  %v360_v1 = vld [vmem:[%s1333_s1 + $0x8] sm:$0xff] (!%p189_p3)  ;;  %v361_v2 = vld [vmem:[%s1333_s1 + $0x10] sm:$0xff] (!%p189_p3)  ;;  %s888_s22 = sshll.u32 (!%p189_p3), %s1109_s12, 5 }
   0x7   : > { %192 = sbr.rel (%p189_p3) target bundleno = 286 (0x11e), region = 32  ;;  %v1023_v3 = vpack.c.bf16 (!%p189_p3), %v360_v1, %v359_v0  ;;  %v362_v4 = vld [vmem:[%s1333_s1 + $0x18] sm:$0xff] (!%p189_p3)  ;;  %p230_p4 = scmp.lt.s32.totalorder (!%p189_p3), %s888_s22, 63  ;;  %v363_v6 = vld [vmem:[%s1333_s1 + $0x20] sm:$0xff] (!%p189_p3)  ;;  %v364_v7 = vld [vmem:[%s1333_s1 + $0x28] sm:$0xff] (!%p189_p3) }
   0x8   : > { %v1027_v5 = vpack.c.bf16 (!%p189_p3), %v362_v4, %v361_v2  ;;  %v1031_v8 = vpack.c.bf16 (!%p189_p3), %v364_v7, %v363_v6  ;;  %v365_v9 = vld [vmem:[%s1333_s1 + $0x30] sm:$0xff] (!%p189_p3)  ;;  %v366_v10 = vld [vmem:[%s1333_s1 + $0x38] sm:$0xff] (!%p189_p3)  ;;  %v367_v14 = vld [vmem:[%s1333_s1 + $0x40] sm:$0xff] (!%p189_p3) }
   0x9   : > { %1024 = vmatprep.subr.bf16.mxu0 (!%p189_p3), %v1023_v3  ;;  %1055 = vmatprep.subr.bf16.mxu1 (!%p189_p3), %v1023_v3  ;;  %v1035_v13 = vpack.c.bf16 (!%p189_p3), %v366_v10, %v365_v9  ;;  %v368_v15 = vld [vmem:[%s1333_s1 + $0x48] sm:$0xff] (!%p189_p3)  ;;  %v369_v17 = vld [vmem:[%s1333_s1 + $0x50] sm:$0xff] (!%p189_p3)  ;;  %v370_v18 = vld [vmem:[%s1333_s1 + $0x58] sm:$0xff] (!%p189_p3) }
   0xa   : > { %1026 = vmatpush3.bf16.msra.mxu0 (!%p189_p3), %v1023_v3  ;;  %1063 = vmatpush3.bf16.msra.mxu1 (!%p189_p3), %v1023_v3  ;;  %v1039_v16 = vpack.c.bf16 (!%p189_p3), %v368_v15, %v367_v14  ;;  %v1043_v19 = vpack.c.bf16 (!%p189_p3), %v370_v18, %v369_v17  ;;  %v371_v20 = vld [vmem:[%s1333_s1 + $0x60] sm:$0xff] (!%p189_p3)  ;;  %v372_v21 = vld [vmem:[%s1333_s1 + $0x68] sm:$0xff] (!%p189_p3)  ;;  %v373_v23 = vld [vmem:[%s1333_s1 + $0x70] sm:$0xff] (!%p189_p3) }
   0xb   : > { %1028 = vmatprep.subr.bf16.mxu0 (!%p189_p3), %v1027_v5  ;;  %1056 = vmatprep.subr.bf16.mxu1 (!%p189_p3), %v1027_v5  ;;  %v1047_v22 = vpack.c.bf16 (!%p189_p3), %v372_v21, %v371_v20  ;;  %v374_v24 = vld [vmem:[%s1333_s1 + $0x78] sm:$0xff] (!%p189_p3)  ;;  %v1250_v56 = vld [vmem:[%s1334_s2] ss:$0 sm:$0xff] (!%p189_p3) }
   0xc   : > { %v1051_v25 = vpack.c.bf16 (!%p189_p3), %v374_v24, %v373_v23 }
   0xe   : > { %s1341_s22 = smov (!%p230_p4, %s888_s22), 63  ;;  %1030 = vmatpush3.bf16.msra.mxu0 %v1027_v5  ;;  %1064 = vmatpush3.bf16.msra.mxu1 %v1027_v5 }
   0xf   : > { %s889_s29 = sshll.u32 %s1341_s22, 3  ;;  %1032 = vmatprep.subr.bf16.mxu0 %v1031_v8  ;;  %1057 = vmatprep.subr.bf16.mxu1 %v1031_v8 }
  0x10   : > { %s1189_s9 = scalar_lea.vmem %s1332_s0, %s889_s29  ;;  %s1257_s8 = scalar_lea.vmem %s1335_s3, %s889_s29 }
  0x11   : > { %v327_v11 = vld [vmem:[%s1189_s9] sm:$0xff]  ;;  %v328_v26 = vld [vmem:[%s1189_s9 + $0x8] sm:$0xff]  ;;  %v329_v28 = vld [vmem:[%s1189_s9 + $0x10] sm:$0xff] }
  0x12   : > { %v343_v12 = vld [vmem:[%s1189_s9 + $0x80] sm:$0xff]  ;;  %975 = vmatprep.mubr.f32.mxu0 %v327_v11  ;;  %1034 = vmatpush3.bf16.msra.mxu0 %v1031_v8  ;;  %v344_v27 = vld [vmem:[%s1189_s9 + $0x88] sm:$0xff]  ;;  %v345_v29 = vld [vmem:[%s1189_s9 + $0x90] sm:$0xff] }
  0x13   : > { %999 = vmatprep.mubr.f32.mxu1 %v343_v12  ;;  %1065 = vmatpush3.bf16.msra.mxu1 %v1031_v8  ;;  %v330_v30 = vld [vmem:[%s1189_s9 + $0x18] sm:$0xff]  ;;  %v331_v32 = vld [vmem:[%s1189_s9 + $0x20] sm:$0xff]  ;;  %v332_v34 = vld [vmem:[%s1189_s9 + $0x28] sm:$0xff] }
  0x14   : > { %1036 = vmatprep.subr.bf16.mxu0 %v1035_v13  ;;  %1058 = vmatprep.subr.bf16.mxu1 %v1035_v13  ;;  %v346_v31 = vld [vmem:[%s1189_s9 + $0x98] sm:$0xff]  ;;  %v347_v33 = vld [vmem:[%s1189_s9 + $0xa0] sm:$0xff]  ;;  %v348_v35 = vld [vmem:[%s1189_s9 + $0xa8] sm:$0xff] }
  0x15   : > { %v333_v36 = vld [vmem:[%s1189_s9 + $0x30] sm:$0xff]  ;;  %v334_v38 = vld [vmem:[%s1189_s9 + $0x38] sm:$0xff]  ;;  %v335_v40 = vld [vmem:[%s1189_s9 + $0x40] sm:$0xff] }
  0x16   : > { %1038 = vmatpush3.bf16.msra.mxu0 %v1035_v13  ;;  %v349_v37 = vld [vmem:[%s1189_s9 + $0xb0] sm:$0xff]  ;;  %v350_v39 = vld [vmem:[%s1189_s9 + $0xb8] sm:$0xff]  ;;  %v351_v41 = vld [vmem:[%s1189_s9 + $0xc0] sm:$0xff] }
  0x17   : > { %1066 = vmatpush3.bf16.msra.mxu1 %v1035_v13  ;;  %1040 = vmatprep.subr.bf16.mxu0 %v1039_v16  ;;  %v336_v42 = vld [vmem:[%s1189_s9 + $0x48] sm:$0xff]  ;;  %v337_v44 = vld [vmem:[%s1189_s9 + $0x50] sm:$0xff]  ;;  %v338_v46 = vld [vmem:[%s1189_s9 + $0x58] sm:$0xff] }
  0x18   : > { %1059 = vmatprep.subr.bf16.mxu1 %v1039_v16  ;;  %v352_v43 = vld [vmem:[%s1189_s9 + $0xc8] sm:$0xff]  ;;  %v353_v45 = vld [vmem:[%s1189_s9 + $0xd0] sm:$0xff]  ;;  %v354_v47 = vld [vmem:[%s1189_s9 + $0xd8] sm:$0xff] }
  0x19   : > { %v339_v48 = vld [vmem:[%s1189_s9 + $0x60] sm:$0xff]  ;;  %v340_v50 = vld [vmem:[%s1189_s9 + $0x68] sm:$0xff]  ;;  %v341_v52 = vld [vmem:[%s1189_s9 + $0x70] sm:$0xff] }
  0x1a   : > { %1042 = vmatpush3.bf16.msra.mxu0 %v1039_v16  ;;  %v355_v49 = vld [vmem:[%s1189_s9 + $0xe0] sm:$0xff]  ;;  %v356_v51 = vld [vmem:[%s1189_s9 + $0xe8] sm:$0xff]  ;;  %v357_v53 = vld [vmem:[%s1189_s9 + $0xf0] sm:$0xff] }
  0x1b   : > { %1067 = vmatpush3.bf16.msra.mxu1 %v1039_v16  ;;  %1044 = vmatprep.subr.bf16.mxu0 %v1043_v19  ;;  %v342_v54 = vld [vmem:[%s1189_s9 + $0x78] sm:$0xff] }
  0x1c   : > { %1060 = vmatprep.subr.bf16.mxu1 %v1043_v19  ;;  %v358_v55 = vld [vmem:[%s1189_s9 + $0xf8] sm:$0xff] }
  0x1e   : > { %1046 = vmatpush3.bf16.msra.mxu0 %v1043_v19 }
  0x1f   : > { %1068 = vmatpush3.bf16.msra.mxu1 %v1043_v19  ;;  %1048 = vmatprep.subr.bf16.mxu0 %v1047_v22 }
  0x20   : > { %1061 = vmatprep.subr.bf16.mxu1 %v1047_v22 }
  0x22   : > { %1050 = vmatpush3.bf16.msra.mxu0 %v1047_v22 }
  0x23   : > { %1069 = vmatpush3.bf16.msra.mxu1 %v1047_v22  ;;  %1052 = vmatprep.subr.bf16.mxu0 %v1051_v25 }
  0x24   : > { %1062 = vmatprep.subr.bf16.mxu1 %v1051_v25 }
  0x26   : > { %1054 = vmatpush3.bf16.msra.mxu0 %v1051_v25 }
  0x27   : > { %1070 = vmatpush3.bf16.msra.mxu1 %v1051_v25 }
  0x29   : > { %976 = vmatmul.mubr.f32.vlgmr.msra.gmra.mrb[0].mxu0 %v328_v26 }
  0x2a   : > { %1000 = vmatmul.mubr.f32.vlgmr.msra.gmra.mrb[0].mxu1 %v344_v27  ;;  %978 = vmatprep.mubr.f32.mxu0 %v329_v28 }
  0x2b   : > { %1002 = vmatprep.mubr.f32.mxu1 %v345_v29 }
  0x2d   : > { %979 = vmatmul.mubr.f32.gmra.mrb[2].mxu0 %v330_v30 }
  0x2e   : > { %1003 = vmatmul.mubr.f32.gmra.mrb[2].mxu1 %v346_v31  ;;  %981 = vmatprep.mubr.f32.mxu0 %v331_v32 }
  0x2f   : > { %1005 = vmatprep.mubr.f32.mxu1 %v347_v33 }
  0x31   : > { %982 = vmatmul.mubr.f32.gmra.mrb[4].mxu0 %v332_v34 }
  0x32   : > { %1006 = vmatmul.mubr.f32.gmra.mrb[4].mxu1 %v348_v35  ;;  %984 = vmatprep.mubr.f32.mxu0 %v333_v36 }
  0x33   : > { %1008 = vmatprep.mubr.f32.mxu1 %v349_v37 }
  0x35   : > { %985 = vmatmul.mubr.f32.gmra.mrb[6].mxu0 %v334_v38 }
  0x36   : > { %1009 = vmatmul.mubr.f32.gmra.mrb[6].mxu1 %v350_v39  ;;  %987 = vmatprep.mubr.f32.mxu0 %v335_v40 }
  0x37   : > { %1011 = vmatprep.mubr.f32.mxu1 %v351_v41 }
  0x39   : > { %988 = vmatmul.mubr.f32.gmra.mrb[8].mxu0 %v336_v42 }
  0x3a   : > { %1012 = vmatmul.mubr.f32.gmra.mrb[8].mxu1 %v352_v43  ;;  %990 = vmatprep.mubr.f32.mxu0 %v337_v44 }
  0x3b   : > { %1014 = vmatprep.mubr.f32.mxu1 %v353_v45 }
  0x3d   : > { %991 = vmatmul.mubr.f32.gmra.mrb[10].mxu0 %v338_v46 }
  0x3e   : > { %1015 = vmatmul.mubr.f32.gmra.mrb[10].mxu1 %v354_v47  ;;  %993 = vmatprep.mubr.f32.mxu0 %v339_v48 }
  0x3f   : > { %1017 = vmatprep.mubr.f32.mxu1 %v355_v49 }
  0x41   : > { %994 = vmatmul.mubr.f32.gmra.mrb[12].mxu0 %v340_v50 }
  0x42   : > { %1018 = vmatmul.mubr.f32.gmra.mrb[12].mxu1 %v356_v51  ;;  %996 = vmatprep.mubr.f32.mxu0 %v341_v52 }
  0x43   : > { %1020 = vmatprep.mubr.f32.mxu1 %v357_v53 }
  0x45   : > { %997 = vmatmul.mubr.f32.gmra.mrb[14].mxu0 %v342_v54 }
  0x46   : > { %1021 = vmatmul.mubr.f32.gmra.mrb[14].mxu1 %v358_v55 }
  0xfc   : > { %v977_v57 = vpop.f32.mrb[0].mxu0 }
  0xfd   : > { %v1001_v58 = vpop.f32.mrb[0].mxu1  ;;  %v707_v59 = vadd.f32 %v977_v57, %v1250_v56  ;;  %v441_v61 = vpop.f32.mrb[1].mxu0 }
  0xfe   : > { %v723_v60 = vadd.f32 %v1001_v58, %v1250_v56  ;;  %v521_v62 = vpop.f32.mrb[1].mxu1  ;;  %v706_v63 = vadd.f32 %v1250_v56, %v441_v61 }
  0xff   : > { %v722_v0 = vadd.f32 %v1250_v56, %v521_v62  ;;  %739 = vst [vmem:[%s1257_s8 + $0x8] sm:$0xff] %v707_v59 }
 0x100   : > { %755 = vst [vmem:[%s1257_s8 + $0x88] sm:$0xff] %v723_v60  ;;  %738 = vst [vmem:[%s1257_s8] sm:$0xff] %v706_v63  ;;  %v980_v1 = vpop.f32.mrb[2].mxu0 }
 0x101   : > { %754 = vst [vmem:[%s1257_s8 + $0x80] sm:$0xff] %v722_v0  ;;  %v1004_v2 = vpop.f32.mrb[2].mxu1  ;;  %v709_v3 = vadd.f32 %v980_v1, %v1250_v56  ;;  %v451_v5 = vpop.f32.mrb[3].mxu0 }
 0x102   : > { %v725_v4 = vadd.f32 %v1004_v2, %v1250_v56  ;;  %v531_v6 = vpop.f32.mrb[3].mxu1  ;;  %v708_v7 = vadd.f32 %v1250_v56, %v451_v5 }
 0x103   : > { %v724_v8 = vadd.f32 %v1250_v56, %v531_v6  ;;  %741 = vst [vmem:[%s1257_s8 + $0x18] sm:$0xff] %v709_v3 }
 0x104   : > { %757 = vst [vmem:[%s1257_s8 + $0x98] sm:$0xff] %v725_v4  ;;  %740 = vst [vmem:[%s1257_s8 + $0x10] sm:$0xff] %v708_v7  ;;  %v983_v9 = vpop.f32.mrb[4].mxu0 }
 0x105   : > { %756 = vst [vmem:[%s1257_s8 + $0x90] sm:$0xff] %v724_v8  ;;  %v1007_v10 = vpop.f32.mrb[4].mxu1  ;;  %v711_v11 = vadd.f32 %v983_v9, %v1250_v56  ;;  %v461_v13 = vpop.f32.mrb[5].mxu0 }
 0x106   : > { %v727_v12 = vadd.f32 %v1007_v10, %v1250_v56  ;;  %v541_v14 = vpop.f32.mrb[5].mxu1  ;;  %v710_v15 = vadd.f32 %v1250_v56, %v461_v13 }
 0x107   : > { %v726_v16 = vadd.f32 %v1250_v56, %v541_v14  ;;  %743 = vst [vmem:[%s1257_s8 + $0x28] sm:$0xff] %v711_v11 }
 0x108   : > { %759 = vst [vmem:[%s1257_s8 + $0xa8] sm:$0xff] %v727_v12  ;;  %742 = vst [vmem:[%s1257_s8 + $0x20] sm:$0xff] %v710_v15  ;;  %v986_v17 = vpop.f32.mrb[6].mxu0 }
 0x109   : > { %758 = vst [vmem:[%s1257_s8 + $0xa0] sm:$0xff] %v726_v16  ;;  %v1010_v18 = vpop.f32.mrb[6].mxu1  ;;  %v713_v19 = vadd.f32 %v986_v17, %v1250_v56  ;;  %v471_v21 = vpop.f32.mrb[7].mxu0 }
 0x10a   : > { %v729_v20 = vadd.f32 %v1010_v18, %v1250_v56  ;;  %v551_v22 = vpop.f32.mrb[7].mxu1  ;;  %v712_v23 = vadd.f32 %v1250_v56, %v471_v21 }
 0x10b   : > { %v728_v24 = vadd.f32 %v1250_v56, %v551_v22  ;;  %745 = vst [vmem:[%s1257_s8 + $0x38] sm:$0xff] %v713_v19 }
 0x10c   : > { %761 = vst [vmem:[%s1257_s8 + $0xb8] sm:$0xff] %v729_v20  ;;  %744 = vst [vmem:[%s1257_s8 + $0x30] sm:$0xff] %v712_v23  ;;  %v989_v25 = vpop.f32.mrb[8].mxu0 }
 0x10d   : > { %760 = vst [vmem:[%s1257_s8 + $0xb0] sm:$0xff] %v728_v24  ;;  %v1013_v26 = vpop.f32.mrb[8].mxu1  ;;  %v715_v27 = vadd.f32 %v989_v25, %v1250_v56  ;;  %v481_v29 = vpop.f32.mrb[9].mxu0 }
 0x10e   : > { %v731_v28 = vadd.f32 %v1013_v26, %v1250_v56  ;;  %v561_v30 = vpop.f32.mrb[9].mxu1  ;;  %v714_v31 = vadd.f32 %v1250_v56, %v481_v29 }
 0x10f   : > { %v730_v32 = vadd.f32 %v1250_v56, %v561_v30  ;;  %747 = vst [vmem:[%s1257_s8 + $0x48] sm:$0xff] %v715_v27 }
 0x110   : > { %763 = vst [vmem:[%s1257_s8 + $0xc8] sm:$0xff] %v731_v28  ;;  %746 = vst [vmem:[%s1257_s8 + $0x40] sm:$0xff] %v714_v31  ;;  %v992_v33 = vpop.f32.mrb[10].mxu0 }
 0x111   : > { %762 = vst [vmem:[%s1257_s8 + $0xc0] sm:$0xff] %v730_v32  ;;  %v1016_v34 = vpop.f32.mrb[10].mxu1  ;;  %v717_v35 = vadd.f32 %v992_v33, %v1250_v56  ;;  %v491_v37 = vpop.f32.mrb[11].mxu0 }
 0x112   : > { %v733_v36 = vadd.f32 %v1016_v34, %v1250_v56  ;;  %v571_v38 = vpop.f32.mrb[11].mxu1  ;;  %v716_v39 = vadd.f32 %v1250_v56, %v491_v37 }
 0x113   : > { %v732_v40 = vadd.f32 %v1250_v56, %v571_v38  ;;  %749 = vst [vmem:[%s1257_s8 + $0x58] sm:$0xff] %v717_v35 }
 0x114   : > { %765 = vst [vmem:[%s1257_s8 + $0xd8] sm:$0xff] %v733_v36  ;;  %748 = vst [vmem:[%s1257_s8 + $0x50] sm:$0xff] %v716_v39  ;;  %v995_v41 = vpop.f32.mrb[12].mxu0 }
 0x115   : > { %764 = vst [vmem:[%s1257_s8 + $0xd0] sm:$0xff] %v732_v40  ;;  %v1019_v42 = vpop.f32.mrb[12].mxu1  ;;  %v719_v43 = vadd.f32 %v995_v41, %v1250_v56  ;;  %v501_v45 = vpop.f32.mrb[13].mxu0 }
 0x116   : > { %v735_v44 = vadd.f32 %v1019_v42, %v1250_v56  ;;  %v581_v46 = vpop.f32.mrb[13].mxu1  ;;  %v718_v47 = vadd.f32 %v1250_v56, %v501_v45 }
 0x117   : > { %v734_v48 = vadd.f32 %v1250_v56, %v581_v46  ;;  %751 = vst [vmem:[%s1257_s8 + $0x68] sm:$0xff] %v719_v43 }
 0x118   : > { %767 = vst [vmem:[%s1257_s8 + $0xe8] sm:$0xff] %v735_v44  ;;  %750 = vst [vmem:[%s1257_s8 + $0x60] sm:$0xff] %v718_v47  ;;  %v998_v49 = vpop.f32.mrb[14].mxu0 }
 0x119   : > { %766 = vst [vmem:[%s1257_s8 + $0xe0] sm:$0xff] %v734_v48  ;;  %v1022_v50 = vpop.f32.mrb[14].mxu1  ;;  %v721_v51 = vadd.f32 %v998_v49, %v1250_v56  ;;  %v511_v53 = vpop.f32.mrb[15].mxu0 }
 0x11a   : > { %v737_v52 = vadd.f32 %v1022_v50, %v1250_v56  ;;  %v591_v54 = vpop.f32.mrb[15].mxu1  ;;  %v720_v55 = vadd.f32 %v1250_v56, %v511_v53 }
 0x11b   : > { %v736_v57 = vadd.f32 %v1250_v56, %v591_v54  ;;  %753 = vst [vmem:[%s1257_s8 + $0x78] sm:$0xff] %v721_v51 }
 0x11c   : > { %769 = vst [vmem:[%s1257_s8 + $0xf8] sm:$0xff] %v737_v52  ;;  %752 = vst [vmem:[%s1257_s8 + $0x70] sm:$0xff] %v720_v55 }
 0x11d   : > { %768 = vst [vmem:[%s1257_s8 + $0xf0] sm:$0xff] %v736_v57 }
 0x11e PF: > { %s13_s14 = sadd.s32 1, %s1117_s14   ;;  %s1336_s12 = smov %s1113_s13 }
 0x11f   : > { %p10_p5 = scmp.ge.s32.totalorder %s13_s14, 4   ;;  %s1337_s13 = smov %s1339_s15 }
 0x121   :  { %12 = sbr.rel (!%p10_p5) target bundleno = 2 (0x2), region = 76 }

</bundles_post_ra>
